<compile_context>
chip_gen: v5e
topology: v5e:2x2
jax: 0.10.0
libtpu: 0.0.40
codegen_flags: <defaults>
</compile_context>

<pallas_src>
import functools

import jax
import jax.numpy as jnp
from jax import lax
from jax.experimental import pallas as pl
from jax.experimental.pallas import tpu as pltpu


# --------------------------------------------------------------------------
# BlockSpec helpers
# --------------------------------------------------------------------------
def _const_spec(shape, index_map, single_buffer):
    """Spec for an input whose block index never changes (weights, bias)."""
    if single_buffer:
        # Double-buffering a constant block buys nothing; halve its VMEM.
        return pl.BlockSpec(shape, index_map, pipeline_mode=pl.Buffered(1))
    return pl.BlockSpec(shape, index_map)


def _pick_tile(t, candidates):
    for c in candidates:
        if t >= c and t % c == 0:
            return c
    return t


# --------------------------------------------------------------------------
# Kernel 1: fused K|V projection (from x) and scaled Q projection (from y)
# --------------------------------------------------------------------------
def _proj_kernel(x_ref, y_ref, wkv_ref, wq_ref, kv_ref, q_ref):
    kv_ref[...] = jnp.dot(x_ref[...], wkv_ref[...],
                          preferred_element_type=jnp.float32).astype(kv_ref.dtype)
    q_ref[...] = jnp.dot(y_ref[...], wq_ref[...],
                         preferred_element_type=jnp.float32).astype(q_ref.dtype)


def _projection_call(xc, yc, wkv, wq, *, tr, compute_dtype, single_buffer):
    t, e = xc.shape
    he2 = wkv.shape[1]          # 2 * h * e  (keys | values packed)
    he = wq.shape[1]            # h * e
    itemsize = jnp.dtype(compute_dtype).itemsize
    wbuf = 1 if single_buffer else 2

    vmem_est = (2 * 2 * tr * e * itemsize                 # x, y row tiles (x2 buf)
                + wbuf * (e * he2 + e * he) * itemsize    # fused weights
                + 2 * tr * (he2 + he) * itemsize          # kv / q output tiles
                + (1 << 20))                              # slop
    ckw = dict(dimension_semantics=("parallel",))
    if vmem_est > (16 << 20):                             # smallest default (v5e)
        ckw["vmem_limit_bytes"] = min(int(1.5 * vmem_est), 56 << 20)

    return pl.pallas_call(
        _proj_kernel,
        out_shape=(jax.ShapeDtypeStruct((t, he2), compute_dtype),
                   jax.ShapeDtypeStruct((t, he), compute_dtype)),
        grid_spec=pltpu.PrefetchScalarGridSpec(
            num_scalar_prefetch=0,
            grid=(t // tr,),
            in_specs=[
                pl.BlockSpec((tr, e), lambda i: (i, 0)),                 # x rows
                pl.BlockSpec((tr, e), lambda i: (i, 0)),                 # y rows
                _const_spec((e, he2), lambda i: (0, 0), single_buffer),  # [Wk|Wv]^T
                _const_spec((e, he), lambda i: (0, 0), single_buffer),   # Wq^T*scale
            ],
            out_specs=[
                pl.BlockSpec((tr, he2), lambda i: (i, 0)),               # K|V packed
                pl.BlockSpec((tr, he), lambda i: (i, 0)),                # Q
            ],
        ),
        compiler_params=pltpu.CompilerParams(**ckw),
    )(xc, yc, wkv, wq)


# --------------------------------------------------------------------------
# Kernel 2: flash-style attention over the KV axis + fused unify projection
# --------------------------------------------------------------------------
def _attn_kernel(q_ref, kv_ref, wu_ref, bu_ref, o_ref, m_sc, l_sc, acc_sc,
                 *, heads, e):
    he = heads * e
    cdt = q_ref.dtype
    kv_i = pl.program_id(1)

    @pl.when(kv_i == 0)
    def _init():
        m_sc[...] = jnp.full(m_sc.shape, -jnp.inf, dtype=m_sc.dtype)
        l_sc[...] = jnp.zeros(l_sc.shape, dtype=l_sc.dtype)
        acc_sc[...] = jnp.zeros(acc_sc.shape, dtype=acc_sc.dtype)

    q = q_ref[...]      # (tq, h*e); softmax scale already folded into Wq
    kv = kv_ref[...]    # (tkv, 2*h*e); [:, :he] = keys, [:, he:] = values

    for hd in range(heads):                       # static unrolled head loop
        q_h = q[:, hd * e:(hd + 1) * e]           # (tq, e)
        k_h = kv[:, hd * e:(hd + 1) * e]          # (tkv, e)
        v_h = kv[:, he + hd * e:he + (hd + 1) * e]  # (tkv, e)

        # q k^T without materializing k^T.
        s = lax.dot_general(q_h, k_h, (((1,), (1,)), ((), ())),
                            preferred_element_type=jnp.float32)  # (tq, tkv) f32

        m_prev = m_sc[:, hd:hd + 1]
        l_prev = l_sc[:, hd:hd + 1]
        acc_prev = acc_sc[:, hd * e:(hd + 1) * e]

        m_new = jnp.maximum(m_prev, jnp.max(s, axis=-1, keepdims=True))
        alpha = jnp.exp(m_prev - m_new)
        p = jnp.exp(s - m_new)

        l_sc[:, hd:hd + 1] = alpha * l_prev + jnp.sum(p, axis=-1, keepdims=True)
        acc_sc[:, hd * e:(hd + 1) * e] = alpha * acc_prev + jnp.dot(
            p.astype(cdt), v_h, preferred_element_type=jnp.float32)
        m_sc[:, hd:hd + 1] = m_new

    @pl.when(kv_i == pl.num_programs(1) - 1)
    def _finalize():
        tq = q.shape[0]
        # Unify projection folded into the head loop: no (tq, h*e) concat.
        out = jnp.broadcast_to(bu_ref[...], (tq, e)).astype(jnp.float32)
        for hd in range(heads):
            # Exact normalization (previous approx reciprocal broke f32 parity).
            o_h = acc_sc[:, hd * e:(hd + 1) * e] / l_sc[:, hd:hd + 1]
            out = out + jnp.dot(o_h.astype(cdt), wu_ref[hd * e:(hd + 1) * e, :],
                                preferred_element_type=jnp.float32)
        o_ref[...] = out.astype(o_ref.dtype)


def _attention_call(q_all, kv_all, wu, bu, *, heads, e, tq, tkv, out_dtype,
                    single_buffer):
    t, he = q_all.shape
    itemsize = q_all.dtype.itemsize
    wbuf = 1 if single_buffer else 2

    # Resident-set estimate including scratch and per-head temporaries.
    vmem_est = (2 * tq * he * itemsize             # Q tile (double-buffered)
                + 2 * tkv * 2 * he * itemsize      # fused K|V tile
                + wbuf * he * e * itemsize         # Wu
                + 2 * tq * e * 4                   # output tile
                + tq * (2 * heads + he) * 4        # m / l / acc scratch
                + 2 * tq * tkv * 4                 # s / p temporaries
                + (1 << 20))
    ckw = dict(dimension_semantics=("parallel", "arbitrary"))
    if vmem_est > (16 << 20):
        ckw["vmem_limit_bytes"] = min(int(1.5 * vmem_est), 56 << 20)

    kernel = functools.partial(_attn_kernel, heads=heads, e=e)
    return pl.pallas_call(
        kernel,
        out_shape=jax.ShapeDtypeStruct((t, e), out_dtype),
        grid_spec=pltpu.PrefetchScalarGridSpec(
            num_scalar_prefetch=0,
            grid=(t // tq, t // tkv),
            in_specs=[
                pl.BlockSpec((tq, he), lambda qi, ki: (qi, 0)),           # Q rows
                pl.BlockSpec((tkv, 2 * he), lambda qi, ki: (ki, 0)),      # K|V rows
                _const_spec((he, e), lambda qi, ki: (0, 0), single_buffer),  # Wu^T
                _const_spec((1, e), lambda qi, ki: (0, 0), single_buffer),   # bias
            ],
            out_specs=pl.BlockSpec((tq, e), lambda qi, ki: (qi, 0)),
            scratch_shapes=[
                pltpu.VMEM((tq, heads), jnp.float32),   # running max (per head)
                pltpu.VMEM((tq, heads), jnp.float32),   # running sum (per head)
                pltpu.VMEM((tq, heads * e), jnp.float32),  # running PV accumulator
            ],
        ),
        compiler_params=pltpu.CompilerParams(**ckw),
    )(q_all, kv_all, wu, bu)


# --------------------------------------------------------------------------
# Public wrapper
# --------------------------------------------------------------------------
def attention_wide(x, y, params, *, heads, compute_dtype=jnp.bfloat16):
    """x, y: (t, e) row-major, matching the PyTorch module."""
    t, e = x.shape
    scale = float(e) ** (-0.5)   # == dividing q and k each by e**0.25

    # PyTorch Linear weight is (out, in) = (h*e, e); transpose to right-multiply
    # form.  Fuse Wk|Wv into one (e, 2*h*e) RHS; fold the scale into Wq.
    wk = params["tokeys"].T
    wv = params["tovalues"].T
    wkv = jnp.concatenate([wk, wv], axis=1).astype(compute_dtype)   # (e, 2*h*e)
    wq = (params["toqueries"].T * scale).astype(compute_dtype)      # (e, h*e)
    wu = params["unifyheads_w"].T.astype(compute_dtype)             # (h*e, e)
    bu = params["unifyheads_b"].reshape(1, e).astype(jnp.float32)

    xc = x.astype(compute_dtype)
    yc = y.astype(compute_dtype)

    # Tile sizes: VMEM bounded independent of t; at test sizes each grid is 1.
    tr = _pick_tile(t, (512, 256, 128))     # projection row tile
    tq = _pick_tile(t, (256, 128))          # query tile (<=256: v7x 64 MiB safe)
    tkv = _pick_tile(t, (512, 256, 128))    # KV tile for the online softmax

    def _run(single_buffer):
        kv_all, q_all = _projection_call(xc, yc, wkv, wq, tr=tr,
                                         compute_dtype=compute_dtype,
                                         single_buffer=single_buffer)
        return _attention_call(q_all, kv_all, wu, bu, heads=heads, e=e,
                               tq=tq, tkv=tkv, out_dtype=x.dtype,
                               single_buffer=single_buffer)

    try:
        return _run(True)       # single-buffer constant-index weight blocks
    except Exception:
        # Fallback if this JAX build rejects pipeline_mode=pl.Buffered(1).
        return _run(False)


# --------------------------------------------------------------------------
# Pure-JAX f32 reference matching the PyTorch forward (dropout = identity)
# --------------------------------------------------------------------------
def _reference(x, y, params, *, heads):
    t, e = x.shape
    h = heads
    scale = float(e) ** 0.25
    keys = (x @ params["tokeys"].T).reshape(t, h, e).transpose(1, 0, 2)
    queries = (y @ params["toqueries"].T).reshape(t, h, e).transpose(1, 0, 2)
    values = (x @ params["tovalues"].T).reshape(t, h, e).transpose(1, 0, 2)
    queries = queries / scale
    keys = keys / scale
    dot = jnp.einsum("hqe,hke->hqk", queries, keys)
    dot = jax.nn.softmax(dot, axis=2)
    out = jnp.einsum("hqk,hke->hqe", dot, values)
    out = out.transpose(1, 0, 2).reshape(t, h * e)
    return out @ params["unifyheads_w"].T + params["unifyheads_b"]


if __name__ == "__main__":
    emb = 32      # e
    heads = 8     # h
    seq = 8       # t

    key = jax.random.PRNGKey(0)
    k_x, k_y, k_wk, k_wq, k_wv, k_wu, k_bu = jax.random.split(key, 7)

    x = jax.random.normal(k_x, (seq, emb), dtype=jnp.float32)
    y = jax.random.normal(k_y, (seq, emb), dtype=jnp.float32)

    # Deterministic parameter init (PyTorch Linear weight convention: (out, in)).
    std = 1.0 / jnp.sqrt(emb)
    params = {
        "tokeys":       jax.random.normal(k_wk, (emb * heads, emb), jnp.float32) * std,
        "toqueries":    jax.random.normal(k_wq, (emb * heads, emb), jnp.float32) * std,
        "tovalues":     jax.random.normal(k_wv, (emb * heads, emb), jnp.float32) * std,
        "unifyheads_w": jax.random.normal(k_wu, (emb, heads * emb), jnp.float32) * std,
        "unifyheads_b": jax.random.normal(k_bu, (emb,), jnp.float32) * std,
    }

    ref = _reference(x, y, params, heads=heads)

    # f32 MXU path: tight check (exact softmax normalization; only summation
    # order differs from the reference).
    out_f32 = attention_wide(x, y, params, heads=heads, compute_dtype=jnp.float32)
    out_f32 = jax.block_until_ready(out_f32)
    assert out_f32.shape == (seq, emb)
    err32 = jnp.max(jnp.abs(out_f32 - ref))
    assert jnp.allclose(out_f32, ref, atol=2e-3, rtol=2e-3), f"f32 max abs err = {err32}"

    # bf16 MXU-operand path (f32 accumulation): loose check.
    out_bf16 = attention_wide(x, y, params, heads=heads, compute_dtype=jnp.bfloat16)
    out_bf16 = jax.block_until_ready(out_bf16)
    assert out_bf16.shape == (seq, emb)
    err16 = jnp.max(jnp.abs(out_bf16 - ref))
    assert jnp.allclose(out_bf16, ref, atol=1e-1, rtol=1e-1), f"bf16 max abs err = {err16}"

    print("KERNEL_OK")
</pallas_src>

<mosaic_0001>
module attributes {stable_mosaic.version = 11 : i64} {
  func.func @_proj_kernel(%arg0: i32, %arg1: memref<8x32xf32, #tpu.memory_space<vmem>>, %arg2: memref<8x32xf32, #tpu.memory_space<vmem>>, %arg3: memref<32x512xf32, #tpu.memory_space<vmem>>, %arg4: memref<32x256xf32, #tpu.memory_space<vmem>>, %arg5: memref<8x512xf32, #tpu.memory_space<vmem>>, %arg6: memref<8x256xf32, #tpu.memory_space<vmem>>) attributes {dimension_semantics = [#tpu.dimension_semantics<parallel>], iteration_bounds = array<i64: 1>, scalar_prefetch = 0 : i64, scratch_operands = 0 : i64, tpu.core_type = #tpu.core_type<tc>, window_params = [{transform_indices = @transform_0, window_bounds = array<i64: 8, 32>}, {transform_indices = @transform_1, window_bounds = array<i64: 8, 32>}, {pipeline_mode = #tpu.pipeline_mode<synchronous>, transform_indices = @transform_2, window_bounds = array<i64: 32, 512>}, {pipeline_mode = #tpu.pipeline_mode<synchronous>, transform_indices = @transform_3, window_bounds = array<i64: 32, 256>}, {transform_indices = @transform_4, window_bounds = array<i64: 8, 512>}, {transform_indices = @transform_5, window_bounds = array<i64: 8, 256>}]} {
    %c0 = arith.constant 0 : index
    %c0_0 = arith.constant 0 : index
    %0 = vector.load %arg1[%c0, %c0_0] : memref<8x32xf32, #tpu.memory_space<vmem>>, vector<8x32xf32>
    %c0_1 = arith.constant 0 : index
    %c0_2 = arith.constant 0 : index
    %1 = vector.load %arg3[%c0_1, %c0_2] : memref<32x512xf32, #tpu.memory_space<vmem>>, vector<32x512xf32>
    %cst = arith.constant dense<0.000000e+00> : vector<8x512xf32>
    %2 = tpu.matmul %0, %1, %cst {dimension_numbers = #tpu.dot_dimension_numbers<[1], [0], [0], [1], [0, 0, 1, 1], [], []>} : vector<8x32xf32>, vector<32x512xf32>, vector<8x512xf32> -> vector<8x512xf32>
    %c0_3 = arith.constant 0 : index
    %c0_4 = arith.constant 0 : index
    %3 = vector.load %arg5[%c0_3, %c0_4] : memref<8x512xf32, #tpu.memory_space<vmem>>, vector<8x512xf32>
    tpu.vector_store %arg5[%c0_3, %c0_4], %2 {strides = array<i32>} : memref<8x512xf32, #tpu.memory_space<vmem>>, vector<8x512xf32>,
    %c0_5 = arith.constant 0 : index
    %c0_6 = arith.constant 0 : index
    %4 = vector.load %arg2[%c0_5, %c0_6] : memref<8x32xf32, #tpu.memory_space<vmem>>, vector<8x32xf32>
    %c0_7 = arith.constant 0 : index
    %c0_8 = arith.constant 0 : index
    %5 = vector.load %arg4[%c0_7, %c0_8] : memref<32x256xf32, #tpu.memory_space<vmem>>, vector<32x256xf32>
    %cst_9 = arith.constant dense<0.000000e+00> : vector<8x256xf32>
    %6 = tpu.matmul %4, %5, %cst_9 {dimension_numbers = #tpu.dot_dimension_numbers<[1], [0], [0], [1], [0, 0, 1, 1], [], []>} : vector<8x32xf32>, vector<32x256xf32>, vector<8x256xf32> -> vector<8x256xf32>
    %c0_10 = arith.constant 0 : index
    %c0_11 = arith.constant 0 : index
    %7 = vector.load %arg6[%c0_10, %c0_11] : memref<8x256xf32, #tpu.memory_space<vmem>>, vector<8x256xf32>
    tpu.vector_store %arg6[%c0_10, %c0_11], %6 {strides = array<i32>} : memref<8x256xf32, #tpu.memory_space<vmem>>, vector<8x256xf32>,
    return
  }
  func.func @transform_0(%arg0: i32) -> (i32, i32) {
    %c0_i32 = arith.constant 0 : i32
    %c0_i32_0 = arith.constant 0 : i32
    return %arg0, %c0_i32 : i32, i32
  }
  func.func @transform_1(%arg0: i32) -> (i32, i32) {
    %c0_i32 = arith.constant 0 : i32
    %c0_i32_0 = arith.constant 0 : i32
    return %arg0, %c0_i32 : i32, i32
  }
  func.func @transform_2(%arg0: i32) -> (i32, i32) {
    %c0_i32 = arith.constant 0 : i32
    %c0_i32_0 = arith.constant 0 : i32
    %c0_i32_1 = arith.constant 0 : i32
    return %c0_i32, %c0_i32_0 : i32, i32
  }
  func.func @transform_3(%arg0: i32) -> (i32, i32) {
    %c0_i32 = arith.constant 0 : i32
    %c0_i32_0 = arith.constant 0 : i32
    %c0_i32_1 = arith.constant 0 : i32
    return %c0_i32, %c0_i32_0 : i32, i32
  }
  func.func @transform_4(%arg0: i32) -> (i32, i32) {
    %c0_i32 = arith.constant 0 : i32
    %c0_i32_0 = arith.constant 0 : i32
    return %arg0, %c0_i32 : i32, i32
  }
  func.func @transform_5(%arg0: i32) -> (i32, i32) {
    %c0_i32 = arith.constant 0 : i32
    %c0_i32_0 = arith.constant 0 : i32
    return %arg0, %c0_i32 : i32, i32
  }
}

module attributes {stable_mosaic.version = 11 : i64} {
  func.func @_proj_kernel(%arg0: i32, %arg1: memref<8x32xf32, #tpu.memory_space<vmem>>, %arg2: memref<8x32xf32, #tpu.memory_space<vmem>>, %arg3: memref<32x512xf32, #tpu.memory_space<vmem>>, %arg4: memref<32x256xf32, #tpu.memory_space<vmem>>, %arg5: memref<8x512xf32, #tpu.memory_space<vmem>>, %arg6: memref<8x256xf32, #tpu.memory_space<vmem>>) attributes {dimension_semantics = [#tpu.dimension_semantics<parallel>], iteration_bounds = array<i64: 1>, scalar_prefetch = 0 : i64, scratch_operands = 0 : i64, tpu.core_type = #tpu.core_type<tc>, window_params = [{transform_indices = @transform_0, window_bounds = array<i64: 8, 32>}, {transform_indices = @transform_1, window_bounds = array<i64: 8, 32>}, {pipeline_mode = #tpu.pipeline_mode<synchronous>, transform_indices = @transform_2, window_bounds = array<i64: 32, 512>}, {pipeline_mode = #tpu.pipeline_mode<synchronous>, transform_indices = @transform_3, window_bounds = array<i64: 32, 256>}, {transform_indices = @transform_4, window_bounds = array<i64: 8, 512>}, {transform_indices = @transform_5, window_bounds = array<i64: 8, 256>}]} {
    %c0 = arith.constant 0 : index
    %c0_0 = arith.constant 0 : index
    %0 = vector.load %arg1[%c0, %c0_0] : memref<8x32xf32, #tpu.memory_space<vmem>>, vector<8x32xf32>
    %c0_1 = arith.constant 0 : index
    %c0_2 = arith.constant 0 : index
    %1 = vector.load %arg3[%c0_1, %c0_2] : memref<32x512xf32, #tpu.memory_space<vmem>>, vector<32x512xf32>
    %cst = arith.constant dense<0.000000e+00> : vector<8x512xf32>
    %2 = tpu.matmul %0, %1, %cst {dimension_numbers = #tpu.dot_dimension_numbers<[1], [0], [0], [1], [0, 0, 1, 1], [], []>} : vector<8x32xf32>, vector<32x512xf32>, vector<8x512xf32> -> vector<8x512xf32>
    %c0_3 = arith.constant 0 : index
    %c0_4 = arith.constant 0 : index
    %3 = vector.load %arg5[%c0_3, %c0_4] : memref<8x512xf32, #tpu.memory_space<vmem>>, vector<8x512xf32>
    tpu.vector_store %arg5[%c0_3, %c0_4], %2 {strides = array<i32>} : memref<8x512xf32, #tpu.memory_space<vmem>>, vector<8x512xf32>,
    %c0_5 = arith.constant 0 : index
    %c0_6 = arith.constant 0 : index
    %4 = vector.load %arg2[%c0_5, %c0_6] : memref<8x32xf32, #tpu.memory_space<vmem>>, vector<8x32xf32>
    %c0_7 = arith.constant 0 : index
    %c0_8 = arith.constant 0 : index
    %5 = vector.load %arg4[%c0_7, %c0_8] : memref<32x256xf32, #tpu.memory_space<vmem>>, vector<32x256xf32>
    %cst_9 = arith.constant dense<0.000000e+00> : vector<8x256xf32>
    %6 = tpu.matmul %4, %5, %cst_9 {dimension_numbers = #tpu.dot_dimension_numbers<[1], [0], [0], [1], [0, 0, 1, 1], [], []>} : vector<8x32xf32>, vector<32x256xf32>, vector<8x256xf32> -> vector<8x256xf32>
    %c0_10 = arith.constant 0 : index
    %c0_11 = arith.constant 0 : index
    %7 = vector.load %arg6[%c0_10, %c0_11] : memref<8x256xf32, #tpu.memory_space<vmem>>, vector<8x256xf32>
    tpu.vector_store %arg6[%c0_10, %c0_11], %6 {strides = array<i32>} : memref<8x256xf32, #tpu.memory_space<vmem>>, vector<8x256xf32>,
    return
  }
  func.func @transform_0(%arg0: i32) -> (i32, i32) {
    %c0_i32 = arith.constant 0 : i32
    %c0_i32_0 = arith.constant 0 : i32
    return %arg0, %c0_i32 : i32, i32
  }
  func.func @transform_1(%arg0: i32) -> (i32, i32) {
    %c0_i32 = arith.constant 0 : i32
    %c0_i32_0 = arith.constant 0 : i32
    return %arg0, %c0_i32 : i32, i32
  }
  func.func @transform_2(%arg0: i32) -> (i32, i32) {
    %c0_i32 = arith.constant 0 : i32
    %c0_i32_0 = arith.constant 0 : i32
    %c0_i32_1 = arith.constant 0 : i32
    return %c0_i32, %c0_i32_0 : i32, i32
  }
  func.func @transform_3(%arg0: i32) -> (i32, i32) {
    %c0_i32 = arith.constant 0 : i32
    %c0_i32_0 = arith.constant 0 : i32
    %c0_i32_1 = arith.constant 0 : i32
    return %c0_i32, %c0_i32_0 : i32, i32
  }
  func.func @transform_4(%arg0: i32) -> (i32, i32) {
    %c0_i32 = arith.constant 0 : i32
    %c0_i32_0 = arith.constant 0 : i32
    return %arg0, %c0_i32 : i32, i32
  }
  func.func @transform_5(%arg0: i32) -> (i32, i32) {
    %c0_i32 = arith.constant 0 : i32
    %c0_i32_0 = arith.constant 0 : i32
    return %arg0, %c0_i32 : i32, i32
  }
}

</mosaic_0001>

<bundles_post_ra>
// kernel: tpu_custom_call.1
= control target key start
LH: loop header
LB: loop body
LE: loop exit
PB: predicated region body
PF: predicated region fallthrough
CT: control target
= control target key end

     0   :  { %11 = vsyncpa [#allocation3], 0  ;;  %s508_s0 = inlined_call_operand.hbm [shape: f32[8,32], index: 0, kind: input, shape index: {}]   ;;  %s509_s1 = inlined_call_operand.hbm [shape: f32[8,32], index: 1, kind: input, shape index: {}]   ;;  %s510_s2 = inlined_call_operand.hbm [shape: f32[32,512], index: 2, kind: input, shape index: {}]   ;;  %s511_s3 = inlined_call_operand.hbm [shape: f32[32,256], index: 3, kind: input, shape index: {}]   ;;  %s512_s4 = inlined_call_operand.hbm [shape: f32[8,512], index: 4, kind: output, shape index: {0}]   ;;  %s513_s5 = inlined_call_operand.hbm [shape: f32[8,256], index: 5, kind: output, shape index: {1}]  }
   0x1   :  { %12 = vsyncpa [#allocation6], 0 }
   0x2   :  { %13 = vsyncpa [#allocation9], 0 }
   0x3   :  { %14 = vsyncpa [#allocation4], 0  ;;  %s32_s20 = sshll.u32 %s509_s1, 4  ;;  %s33_s20 = int_to_ptr.hbm [resolvable:$true] %s32_s20 }
   0x4   :  { %15 = vsyncpa [#allocation12], 0  ;;  %s444_s21 = smov [#allocation5]   ;;  %s21_s25 = sshll.u32 %s508_s0, 4  ;;  %s22_s25 = int_to_ptr.hbm [resolvable:$true] %s21_s25 }
   0x5   :  { %s34_s22 = sshll.u32 %s444_s21, 4  ;;  %s445_s26 = smov [#allocation2]   ;;  %s35_s22 = int_to_ptr.vmem [resolvable:$true] %s34_s22 }
   0x6   :  { %37 = dma.hbm_to_vmem [thread:$0]  %s33_s20, 128, %s35_s22, [#allocation6]  }
   0x7   :  { %s23_s27 = sshll.u32 %s445_s26, 4  ;;  %s42_s30 = sshll.u32 %s510_s2, 4  ;;  %s24_s27 = int_to_ptr.vmem [resolvable:$true] %s23_s27  ;;  %s43_s30 = int_to_ptr.hbm [resolvable:$true] %s42_s30 }
   0x8   :  { %26 = dma.hbm_to_vmem [thread:$0]  %s22_s25, 128, %s24_s27, [#allocation3]  }
   0x9   :  { %s446_s1 = smov [#allocation7]   ;;  %s55_s9 = sshll.u32 %s511_s3, 4  ;;  %s56_s9 = int_to_ptr.hbm [resolvable:$true] %s55_s9 }
   0xa   :  { %s44_s6 = sshll.u32 %s446_s1, 4  ;;  %s447_s10 = smov 512   ;;  %s45_s6 = int_to_ptr.vmem [resolvable:$true] %s44_s6 }
   0xb   :  { %s448_s0 = smov 32   ;;  %s449_s11 = smov [#allocation8]  }
   0xc   :  { %50 = dma.hbm_to_vmem [thread:$0]  %s43_s30, 2048, %s45_s6, [#allocation6], %s447_s10, %s447_s10, %s448_s0  }
   0xd   :  { %s57_s12 = sshll.u32 %s449_s11, 4  ;;  %s450_s13 = smov 256   ;;  %s58_s12 = int_to_ptr.vmem [resolvable:$true] %s57_s12 }
   0xe   :  { %s451_s14 = smov 16  }
   0xf   :  { %63 = dma.hbm_to_vmem [thread:$0]  %s56_s9, 1024, %s58_s12, [#allocation9], %s450_s13, %s450_s13, %s451_s14  }
  0x10   :  { %434 = dma.done.wait [#allocation3], 128  }
  0x11   :  { %435 = vsyncadd [#allocation3], 4294967168 }
  0x12   :  { %436 = dma.done.wait [#allocation6], 2176  }
  0x13   :  { %437 = vsyncadd [#allocation6], 4294965120 }
  0x14   :  { %438 = dma.done.wait [#allocation9], 1024  }
  0x15   :  { %439 = vsyncadd [#allocation9], 4294966272  ;;  %v93_v0 = vld [vmem:[#allocation7 + $0x60] sm:$0xff]  ;;  %v94_v1 = vld [vmem:[#allocation7 + $0x68] sm:$0xff]  ;;  %vm97_vm0 = vcmask 261120   ;;  %s452_s2 = smov [#allocation10]  }
  0x16   :  { %v89_v2 = vld [vmem:[#allocation7 + $0x40] sm:$0xff]  ;;  %113 = vmatpush.msra.mxu0 %v93_v0  ;;  %133 = vmatpush.msra.mxu1 %v94_v1  ;;  %v90_v3 = vld [vmem:[#allocation7 + $0x48] sm:$0xff]  ;;  %v95_v4 = vld [vmem:[#allocation7 + $0x70] sm:$0xff]  ;;  %s244_s3 = sshll.u32 %s452_s2, 4  ;;  %s246_s17 = sshll.u32 %s512_s4, 4  ;;  %s245_s3 = int_to_ptr.vmem [resolvable:$true] %s244_s3  ;;  %s247_s17 = int_to_ptr.hbm [resolvable:$true] %s246_s17 }
  0x17   :  { %v96_v5 = vld [vmem:[#allocation7 + $0x78] sm:$0xff]  ;;  %153 = vmatpush.msra.mxu2 %v95_v4  ;;  %v85_v6 = vld [vmem:[#allocation7 + $0x20] sm:$0xff]  ;;  %v86_v7 = vld [vmem:[#allocation7 + $0x28] sm:$0xff]  ;;  %s453_s18 = smov [#allocation11]   ;;  %s257_s22 = sshll.u32 %s513_s5, 4  ;;  %s258_s22 = int_to_ptr.hbm [resolvable:$true] %s257_s22 }
  0x18   :  { %173 = vmatpush.msra.mxu3 %v96_v5  ;;  %v91_v8 = vld [vmem:[#allocation7 + $0x50] sm:$0xff]  ;;  %114 = vmatpush.msra.mxu0 %v89_v2  ;;  %v92_v9 = vld [vmem:[#allocation7 + $0x58] sm:$0xff]  ;;  %v81_v10 = vld [vmem:[#allocation7] sm:$0xff]  ;;  %s255_s19 = sshll.u32 %s453_s18, 4  ;;  %s256_s19 = int_to_ptr.vmem [resolvable:$true] %s255_s19 }
  0x19   :  { %134 = vmatpush.msra.mxu1 %v90_v3  ;;  %154 = vmatpush.msra.mxu2 %v91_v8  ;;  %v82_v11 = vld [vmem:[#allocation7 + $0x8] sm:$0xff]  ;;  %v87_v12 = vld [vmem:[#allocation7 + $0x30] sm:$0xff]  ;;  %v88_v13 = vld [vmem:[#allocation7 + $0x38] sm:$0xff] }
  0x1a   :  { %174 = vmatpush.msra.mxu3 %v92_v9  ;;  %115 = vmatpush.msra.mxu0 %v85_v6  ;;  %v80_v14 = vld [vmem:[#allocation2] sm:$0xff]  ;;  %v193_v16 = vld [vmem:[#allocation8 + $0x38] sm:$0xff]  ;;  %v190_v19 = vld [vmem:[#allocation8 + $0x20] sm:$0xff] }
  0x1b   :  { %135 = vmatpush.msra.mxu1 %v86_v7  ;;  %155 = vmatpush.msra.mxu2 %v87_v12  ;;  %v192_v15 = vld [vmem:[#allocation8 + $0x30] sm:$0xff]  ;;  %v84_v18 = vld [vmem:[#allocation7 + $0x18] sm:$0xff]  ;;  %v191_v20 = vld [vmem:[#allocation8 + $0x28] sm:$0xff] }
  0x1c   :  { %175 = vmatpush.msra.mxu3 %v88_v13  ;;  %116 = vmatpush.msra.mxu0 %v81_v10  ;;  %v83_v17 = vld [vmem:[#allocation7 + $0x10] sm:$0xff]  ;;  %v189_v22 = vld [vmem:[#allocation8 + $0x18] sm:$0xff]  ;;  %v186_v23 = vld [vmem:[#allocation8] sm:$0xff] }
  0x1d   :  { %136 = vmatpush.msra.mxu1 %v82_v11  ;;  %274 = vmatmul.msk.f32.vlgmr.msra.gmra.mxu0 %vm97_vm0, %v80_v14  ;;  %v188_v21 = vld [vmem:[#allocation8 + $0x10] sm:$0xff]  ;;  %v187_v24 = vld [vmem:[#allocation8 + $0x8] sm:$0xff]  ;;  %v185_v25 = vld [vmem:[#allocation5] sm:$0xff] }
  0x1e   :  { %275 = vmatmul.msk.f32.vlgmr.msra.gmra.mxu1 %vm97_vm0, %v80_v14  ;;  %209 = vmatpush.msrb.mxu0 %v192_v15 }
  0x1f   :  { %229 = vmatpush.msrb.mxu1 %v193_v16  ;;  %156 = vmatpush.msra.mxu2 %v83_v17 }
  0x20   :  { %176 = vmatpush.msra.mxu3 %v84_v18  ;;  %276 = vmatmul.msk.f32.vlgmr.msra.gmra.mxu2 %vm97_vm0, %v80_v14 }
  0x21   :  { %277 = vmatmul.msk.f32.vlgmr.msra.gmra.mxu3 %vm97_vm0, %v80_v14  ;;  %210 = vmatpush.msrb.mxu0 %v190_v19 }
  0x22   :  { %230 = vmatpush.msrb.mxu1 %v191_v20 }
  0x23   :  { %211 = vmatpush.msrb.mxu0 %v188_v21 }
  0x24   :  { %231 = vmatpush.msrb.mxu1 %v189_v22 }
  0x25   :  { %212 = vmatpush.msrb.mxu0 %v186_v23 }
  0x26   :  { %232 = vmatpush.msrb.mxu1 %v187_v24  ;;  %278 = vmatmul.msk.f32.vlgmr.msrb.gmra.mxu0 %vm97_vm0, %v185_v25 }
  0x27   :  { %279 = vmatmul.msk.f32.vlgmr.msrb.gmra.mxu1 %vm97_vm0, %v185_v25 }
  0x9a   :  { %v118_v26 = vpop.f32.mrf.mxu0 }
  0x9b   :  { %v138_v27 = vpop.f32.mrf.mxu1  ;;  %181 = vst [vmem:[#allocation10] sm:$0xff] %v118_v26 }
  0x9c   :  { %182 = vst [vmem:[#allocation10 + $0x8] sm:$0xff] %v138_v27 }
  0xa3   :  { %v158_v28 = vpop.f32.mrf.mxu2  ;;  %v214_v30 = vpop.f32.mrf.mxu0 }
  0xa4   :  { %v178_v29 = vpop.f32.mrf.mxu3  ;;  %183 = vst [vmem:[#allocation10 + $0x10] sm:$0xff] %v158_v28  ;;  %v234_v31 = vpop.f32.mrf.mxu1 }
  0xa5   :  { %184 = vst [vmem:[#allocation10 + $0x18] sm:$0xff] %v178_v29 }
  0xa6   :  { %237 = vst [vmem:[#allocation11] sm:$0xff] %v214_v30  ;;  %249 = dma.vmem_to_hbm [thread:$0]  %s245_s3, 512, %s247_s17, [#allocation4]  }
  0xa7   :  { %238 = vst [vmem:[#allocation11 + $0x8] sm:$0xff] %v234_v31 }
  0xa8   :  { %260 = dma.vmem_to_hbm [thread:$0]  %s256_s19, 256, %s258_s22, [#allocation12]  }
  0xa9   :  { %440 = dma.done.wait [#allocation4], 512  }
  0xaa   :  { %441 = vsyncadd [#allocation4], 4294966784 }
  0xab   :  { %442 = dma.done.wait [#allocation12], 256  }
  0xac   :  { %443 = vsyncadd [#allocation12], 4294967040 }
  0xad   :  { %269 = vsyncpa [#allocation3], 1 }
  0xae   :  { %270 = vsyncpa [#allocation6], 1 }
  0xaf   :  { %271 = vsyncpa [#allocation9], 1 }
  0xb0   :  { %272 = vsyncpa [#allocation4], 1 }
  0xb1   :  { %273 = vsyncpa [#allocation12], 1 }

// kernel: tpu_custom_call.1
= control target key start
LH: loop header
LB: loop body
LE: loop exit
PB: predicated region body
PF: predicated region fallthrough
CT: control target
= control target key end

     0   :  { %11 = vsyncpa [#allocation3], 0  ;;  %s508_s0 = inlined_call_operand.hbm [shape: f32[8,32], index: 0, kind: input, shape index: {}]   ;;  %s509_s1 = inlined_call_operand.hbm [shape: f32[8,32], index: 1, kind: input, shape index: {}]   ;;  %s510_s2 = inlined_call_operand.hbm [shape: f32[32,512], index: 2, kind: input, shape index: {}]   ;;  %s511_s3 = inlined_call_operand.hbm [shape: f32[32,256], index: 3, kind: input, shape index: {}]   ;;  %s512_s4 = inlined_call_operand.hbm [shape: f32[8,512], index: 4, kind: output, shape index: {0}]   ;;  %s513_s5 = inlined_call_operand.hbm [shape: f32[8,256], index: 5, kind: output, shape index: {1}]  }
   0x1   :  { %12 = vsyncpa [#allocation6], 0 }
   0x2   :  { %13 = vsyncpa [#allocation9], 0 }
   0x3   :  { %14 = vsyncpa [#allocation4], 0  ;;  %s32_s20 = sshll.u32 %s509_s1, 4  ;;  %s33_s20 = int_to_ptr.hbm [resolvable:$true] %s32_s20 }
   0x4   :  { %15 = vsyncpa [#allocation12], 0  ;;  %s444_s21 = smov [#allocation5]   ;;  %s21_s25 = sshll.u32 %s508_s0, 4  ;;  %s22_s25 = int_to_ptr.hbm [resolvable:$true] %s21_s25 }
   0x5   :  { %s34_s22 = sshll.u32 %s444_s21, 4  ;;  %s445_s26 = smov [#allocation2]   ;;  %s35_s22 = int_to_ptr.vmem [resolvable:$true] %s34_s22 }
   0x6   :  { %37 = dma.hbm_to_vmem [thread:$0]  %s33_s20, 128, %s35_s22, [#allocation6]  }
   0x7   :  { %s23_s27 = sshll.u32 %s445_s26, 4  ;;  %s42_s30 = sshll.u32 %s510_s2, 4  ;;  %s24_s27 = int_to_ptr.vmem [resolvable:$true] %s23_s27  ;;  %s43_s30 = int_to_ptr.hbm [resolvable:$true] %s42_s30 }
   0x8   :  { %26 = dma.hbm_to_vmem [thread:$0]  %s22_s25, 128, %s24_s27, [#allocation3]  }
   0x9   :  { %s446_s1 = smov [#allocation7]   ;;  %s55_s9 = sshll.u32 %s511_s3, 4  ;;  %s56_s9 = int_to_ptr.hbm [resolvable:$true] %s55_s9 }
   0xa   :  { %s44_s6 = sshll.u32 %s446_s1, 4  ;;  %s447_s10 = smov 512   ;;  %s45_s6 = int_to_ptr.vmem [resolvable:$true] %s44_s6 }
   0xb   :  { %s448_s0 = smov 32   ;;  %s449_s11 = smov [#allocation8]  }
   0xc   :  { %50 = dma.hbm_to_vmem [thread:$0]  %s43_s30, 2048, %s45_s6, [#allocation6], %s447_s10, %s447_s10, %s448_s0  }
   0xd   :  { %s57_s12 = sshll.u32 %s449_s11, 4  ;;  %s450_s13 = smov 256   ;;  %s58_s12 = int_to_ptr.vmem [resolvable:$true] %s57_s12 }
   0xe   :  { %s451_s14 = smov 16  }
   0xf   :  { %63 = dma.hbm_to_vmem [thread:$0]  %s56_s9, 1024, %s58_s12, [#allocation9], %s450_s13, %s450_s13, %s451_s14  }
  0x10   :  { %434 = dma.done.wait [#allocation3], 128  }
  0x11   :  { %435 = vsyncadd [#allocation3], 4294967168 }
  0x12   :  { %436 = dma.done.wait [#allocation6], 2176  }
  0x13   :  { %437 = vsyncadd [#allocation6], 4294965120 }
  0x14   :  { %438 = dma.done.wait [#allocation9], 1024  }
  0x15   :  { %439 = vsyncadd [#allocation9], 4294966272  ;;  %v93_v0 = vld [vmem:[#allocation7 + $0x60] sm:$0xff]  ;;  %v94_v1 = vld [vmem:[#allocation7 + $0x68] sm:$0xff]  ;;  %vm97_vm0 = vcmask 261120   ;;  %s452_s2 = smov [#allocation10]  }
  0x16   :  { %v89_v2 = vld [vmem:[#allocation7 + $0x40] sm:$0xff]  ;;  %113 = vmatpush.msra.mxu0 %v93_v0  ;;  %133 = vmatpush.msra.mxu1 %v94_v1  ;;  %v90_v3 = vld [vmem:[#allocation7 + $0x48] sm:$0xff]  ;;  %v95_v4 = vld [vmem:[#allocation7 + $0x70] sm:$0xff]  ;;  %s244_s3 = sshll.u32 %s452_s2, 4  ;;  %s246_s17 = sshll.u32 %s512_s4, 4  ;;  %s245_s3 = int_to_ptr.vmem [resolvable:$true] %s244_s3  ;;  %s247_s17 = int_to_ptr.hbm [resolvable:$true] %s246_s17 }
  0x17   :  { %v96_v5 = vld [vmem:[#allocation7 + $0x78] sm:$0xff]  ;;  %153 = vmatpush.msra.mxu2 %v95_v4  ;;  %v85_v6 = vld [vmem:[#allocation7 + $0x20] sm:$0xff]  ;;  %v86_v7 = vld [vmem:[#allocation7 + $0x28] sm:$0xff]  ;;  %s453_s18 = smov [#allocation11]   ;;  %s257_s22 = sshll.u32 %s513_s5, 4  ;;  %s258_s22 = int_to_ptr.hbm [resolvable:$true] %s257_s22 }
  0x18   :  { %173 = vmatpush.msra.mxu3 %v96_v5  ;;  %v91_v8 = vld [vmem:[#allocation7 + $0x50] sm:$0xff]  ;;  %114 = vmatpush.msra.mxu0 %v89_v2  ;;  %v92_v9 = vld [vmem:[#allocation7 + $0x58] sm:$0xff]  ;;  %v81_v10 = vld [vmem:[#allocation7] sm:$0xff]  ;;  %s255_s19 = sshll.u32 %s453_s18, 4  ;;  %s256_s19 = int_to_ptr.vmem [resolvable:$true] %s255_s19 }
  0x19   :  { %134 = vmatpush.msra.mxu1 %v90_v3  ;;  %154 = vmatpush.msra.mxu2 %v91_v8  ;;  %v82_v11 = vld [vmem:[#allocation7 + $0x8] sm:$0xff]  ;;  %v87_v12 = vld [vmem:[#allocation7 + $0x30] sm:$0xff]  ;;  %v88_v13 = vld [vmem:[#allocation7 + $0x38] sm:$0xff] }
  0x1a   :  { %174 = vmatpush.msra.mxu3 %v92_v9  ;;  %115 = vmatpush.msra.mxu0 %v85_v6  ;;  %v80_v14 = vld [vmem:[#allocation2] sm:$0xff]  ;;  %v193_v16 = vld [vmem:[#allocation8 + $0x38] sm:$0xff]  ;;  %v190_v19 = vld [vmem:[#allocation8 + $0x20] sm:$0xff] }
  0x1b   :  { %135 = vmatpush.msra.mxu1 %v86_v7  ;;  %155 = vmatpush.msra.mxu2 %v87_v12  ;;  %v192_v15 = vld [vmem:[#allocation8 + $0x30] sm:$0xff]  ;;  %v84_v18 = vld [vmem:[#allocation7 + $0x18] sm:$0xff]  ;;  %v191_v20 = vld [vmem:[#allocation8 + $0x28] sm:$0xff] }
  0x1c   :  { %175 = vmatpush.msra.mxu3 %v88_v13  ;;  %116 = vmatpush.msra.mxu0 %v81_v10  ;;  %v83_v17 = vld [vmem:[#allocation7 + $0x10] sm:$0xff]  ;;  %v189_v22 = vld [vmem:[#allocation8 + $0x18] sm:$0xff]  ;;  %v186_v23 = vld [vmem:[#allocation8] sm:$0xff] }
  0x1d   :  { %136 = vmatpush.msra.mxu1 %v82_v11  ;;  %274 = vmatmul.msk.f32.vlgmr.msra.gmra.mxu0 %vm97_vm0, %v80_v14  ;;  %v188_v21 = vld [vmem:[#allocation8 + $0x10] sm:$0xff]  ;;  %v187_v24 = vld [vmem:[#allocation8 + $0x8] sm:$0xff]  ;;  %v185_v25 = vld [vmem:[#allocation5] sm:$0xff] }
  0x1e   :  { %275 = vmatmul.msk.f32.vlgmr.msra.gmra.mxu1 %vm97_vm0, %v80_v14  ;;  %209 = vmatpush.msrb.mxu0 %v192_v15 }
  0x1f   :  { %229 = vmatpush.msrb.mxu1 %v193_v16  ;;  %156 = vmatpush.msra.mxu2 %v83_v17 }
  0x20   :  { %176 = vmatpush.msra.mxu3 %v84_v18  ;;  %276 = vmatmul.msk.f32.vlgmr.msra.gmra.mxu2 %vm97_vm0, %v80_v14 }
  0x21   :  { %277 = vmatmul.msk.f32.vlgmr.msra.gmra.mxu3 %vm97_vm0, %v80_v14  ;;  %210 = vmatpush.msrb.mxu0 %v190_v19 }
  0x22   :  { %230 = vmatpush.msrb.mxu1 %v191_v20 }
  0x23   :  { %211 = vmatpush.msrb.mxu0 %v188_v21 }
  0x24   :  { %231 = vmatpush.msrb.mxu1 %v189_v22 }
  0x25   :  { %212 = vmatpush.msrb.mxu0 %v186_v23 }
  0x26   :  { %232 = vmatpush.msrb.mxu1 %v187_v24  ;;  %278 = vmatmul.msk.f32.vlgmr.msrb.gmra.mxu0 %vm97_vm0, %v185_v25 }
  0x27   :  { %279 = vmatmul.msk.f32.vlgmr.msrb.gmra.mxu1 %vm97_vm0, %v185_v25 }
  0x9a   :  { %v118_v26 = vpop.f32.mrf.mxu0 }
  0x9b   :  { %v138_v27 = vpop.f32.mrf.mxu1  ;;  %181 = vst [vmem:[#allocation10] sm:$0xff] %v118_v26 }
  0x9c   :  { %182 = vst [vmem:[#allocation10 + $0x8] sm:$0xff] %v138_v27 }
  0xa3   :  { %v158_v28 = vpop.f32.mrf.mxu2  ;;  %v214_v30 = vpop.f32.mrf.mxu0 }
  0xa4   :  { %v178_v29 = vpop.f32.mrf.mxu3  ;;  %183 = vst [vmem:[#allocation10 + $0x10] sm:$0xff] %v158_v28  ;;  %v234_v31 = vpop.f32.mrf.mxu1 }
  0xa5   :  { %184 = vst [vmem:[#allocation10 + $0x18] sm:$0xff] %v178_v29 }
  0xa6   :  { %237 = vst [vmem:[#allocation11] sm:$0xff] %v214_v30  ;;  %249 = dma.vmem_to_hbm [thread:$0]  %s245_s3, 512, %s247_s17, [#allocation4]  }
  0xa7   :  { %238 = vst [vmem:[#allocation11 + $0x8] sm:$0xff] %v234_v31 }
  0xa8   :  { %260 = dma.vmem_to_hbm [thread:$0]  %s256_s19, 256, %s258_s22, [#allocation12]  }
  0xa9   :  { %440 = dma.done.wait [#allocation4], 512  }
  0xaa   :  { %441 = vsyncadd [#allocation4], 4294966784 }
  0xab   :  { %442 = dma.done.wait [#allocation12], 256  }
  0xac   :  { %443 = vsyncadd [#allocation12], 4294967040 }
  0xad   :  { %269 = vsyncpa [#allocation3], 1 }
  0xae   :  { %270 = vsyncpa [#allocation6], 1 }
  0xaf   :  { %271 = vsyncpa [#allocation9], 1 }
  0xb0   :  { %272 = vsyncpa [#allocation4], 1 }
  0xb1   :  { %273 = vsyncpa [#allocation12], 1 }

</bundles_post_ra>
